<compile_context>
chip_gen: v7x
topology: tpu7x:2x2x1
jax: 0.10.0
libtpu: 0.0.40
codegen_flags: <defaults>
</compile_context>

<pallas_src>
import jax
import jax.numpy as jnp
from jax.experimental import pallas as pl
from jax.experimental.pallas import tpu as pltpu


def _round_up(x, m):
    return ((x + m - 1) // m) * m


def _critic_fc_kernel_reduce(x_ref, w1_ref, b1_ref, w2_ref, b2_ref, o_ref):
    """Fused first layer on the MXU; output head as a VPU/XLU lane reduce.

    x_ref : [TB, 2A]   batch tile of [s | weight]
    w1_ref: [2A, Hp]   stacked fcs/fca weights (hidden padded to 128)
    b1_ref: [1, Hp]    bfcs + bfca
    w2_ref: [1, Hp]    out.weight transposed (output_dim == 1)
    b2_ref: [1, 1]     out.bias
    o_ref : [TB, 1]
    """
    h = jnp.dot(x_ref[...], w1_ref[...], preferred_element_type=jnp.float32)
    h = jnp.maximum(h + b1_ref[...], 0.0)
    # N=1 MXU pass would waste 127/128 of the array; use VPU mul + lane reduce.
    val = jnp.sum(h * w2_ref[...], axis=-1, keepdims=True) + b2_ref[...]
    o_ref[...] = val.astype(o_ref.dtype)


def _critic_fc_kernel_matmul(x_ref, w1_ref, b1_ref, w2_ref, b2_ref, o_ref):
    """Same as above but with an MXU second layer for output_dim > 1."""
    h = jnp.dot(x_ref[...], w1_ref[...], preferred_element_type=jnp.float32)
    h = jnp.maximum(h + b1_ref[...], 0.0)
    val = jnp.dot(h, w2_ref[...], preferred_element_type=jnp.float32) + b2_ref[...]
    o_ref[...] = val.astype(o_ref.dtype)


def critic_fc_forward(s, weight, params, *, tile_b=256):
    """CriticFC forward in one batch-tiled Pallas kernel.

    s, weight : [batch, action_dim] float32
    params    : dict with wfcs [A,H], bfcs [1,H], wfca [A,H], bfca [1,H],
                wout [H,O], bout [1,O]   (weights stored transposed: [in, out])
    returns   : [batch, output_dim] float32
    """
    batch, action_dim = s.shape
    hidden_dim = params["wfcs"].shape[1]
    output_dim = params["wout"].shape[1]
    two_a = 2 * action_dim

    # ---- Fuse the two first-layer projections into one matmul ----
    x = jnp.concatenate([s, weight], axis=1).astype(jnp.float32)       # [B, 2A]
    w1 = jnp.concatenate([params["wfcs"], params["wfca"]], axis=0)     # [2A, H]
    w1 = w1.astype(jnp.float32)
    b1 = (params["bfcs"] + params["bfca"]).astype(jnp.float32)         # [1, H]

    # ---- Pad hidden to a lane-aligned width (zero columns are inert) ----
    h_pad = _round_up(hidden_dim, 128)
    wout = params["wout"].astype(jnp.float32)
    if h_pad != hidden_dim:
        w1 = jnp.pad(w1, ((0, 0), (0, h_pad - hidden_dim)))
        b1 = jnp.pad(b1, ((0, 0), (0, h_pad - hidden_dim)))
        wout = jnp.pad(wout, ((0, h_pad - hidden_dim), (0, 0)))
    bout = params["bout"].astype(jnp.float32)

    # ---- Output head: lane-reduce path when output_dim == 1 ----
    use_reduce = output_dim == 1
    if use_reduce:
        w2 = wout.T                      # [1, Hp]
        kernel = _critic_fc_kernel_reduce
    else:
        w2 = wout                        # [Hp, O]
        kernel = _critic_fc_kernel_matmul

    # ---- Batch tiling (sublane-aligned tile, pad batch to a multiple) ----
    tb = min(tile_b, _round_up(batch, 8))
    b_pad = _round_up(batch, tb)
    if b_pad != batch:
        x = jnp.pad(x, ((0, b_pad - batch), (0, 0)))
    grid = (b_pad // tb,)

    # Advisory cost hint so XLA can overlap this small call with neighbors.
    flops = 2 * b_pad * two_a * h_pad + 2 * b_pad * h_pad * output_dim
    bytes_accessed = 4 * (x.size + w1.size + b1.size + w2.size + bout.size
                          + b_pad * output_dim)

    # Weights/biases: constant index_map -> VMEM-resident across grid steps.
    resident = lambda a: pl.BlockSpec(a.shape, lambda i: (0, 0))

    out = pl.pallas_call(
        kernel,
        out_shape=jax.ShapeDtypeStruct((b_pad, output_dim), jnp.float32),
        grid=grid,
        in_specs=[
            pl.BlockSpec((tb, two_a), lambda i: (i, 0)),   # batch-tiled input
            resident(w1),
            resident(b1),
            resident(w2),
            resident(bout),
        ],
        out_specs=pl.BlockSpec((tb, output_dim), lambda i: (i, 0)),
        compiler_params=pltpu.CompilerParams(
            dimension_semantics=("parallel",)),
        cost_estimate=pl.CostEstimate(flops=flops, transcendentals=0,
                                      bytes_accessed=bytes_accessed),
    )(x, w1, b1, w2, bout)

    return out[:batch]


def init_critic_fc_params(key, action_dim, hidden_dim, output_dim):
    """Deterministic init matching nn.Linear's default U(-1/sqrt(fan_in), +)."""
    ks = jax.random.split(key, 6)

    def linear(kw, kb, fan_in, fan_out):
        bound = 1.0 / jnp.sqrt(fan_in)
        # Store weight transposed: [in, out]
        w = jax.random.uniform(kw, (fan_in, fan_out), jnp.float32,
                               minval=-bound, maxval=bound)
        b = jax.random.uniform(kb, (1, fan_out), jnp.float32,
                               minval=-bound, maxval=bound)
        return w, b

    wfcs, bfcs = linear(ks[0], ks[1], action_dim, hidden_dim)
    wfca, bfca = linear(ks[2], ks[3], action_dim, hidden_dim)
    wout, bout = linear(ks[4], ks[5], hidden_dim, output_dim)
    return dict(wfcs=wfcs, bfcs=bfcs, wfca=wfca, bfca=bfca,
                wout=wout, bout=bout)


def _reference(s, weight, params):
    v1 = s @ params["wfcs"] + params["bfcs"]
    v2 = weight @ params["wfca"] + params["bfca"]
    return jnp.maximum(v1 + v2, 0.0) @ params["wout"] + params["bout"]


if __name__ == "__main__":
    # Small shapes consistent with the module's forward.
    batch, action_dim, hidden_dim, output_dim = 2, 4, 32, 1

    key = jax.random.PRNGKey(0)
    k_s, k_w, k_p = jax.random.split(key, 3)

    s = jax.random.normal(k_s, (batch, action_dim), jnp.float32)
    weight = jax.random.normal(k_w, (batch, action_dim), jnp.float32)
    params = init_critic_fc_params(k_p, action_dim, hidden_dim, output_dim)

    out = critic_fc_forward(s, weight, params)
    out = jax.block_until_ready(out)
    ref = _reference(s, weight, params)
    assert out.shape == (batch, output_dim)
    assert jnp.allclose(out, ref, atol=1e-5, rtol=1e-5)

    # Also exercise the multi-tile grid + batch-padding path.
    k_s2, k_w2 = jax.random.split(jax.random.PRNGKey(1), 2)
    batch2 = 300
    s2 = jax.random.normal(k_s2, (batch2, action_dim), jnp.float32)
    w2 = jax.random.normal(k_w2, (batch2, action_dim), jnp.float32)
    out2 = jax.block_until_ready(critic_fc_forward(s2, w2, params))
    ref2 = _reference(s2, w2, params)
    assert out2.shape == (batch2, output_dim)
    assert jnp.allclose(out2, ref2, atol=1e-5, rtol=1e-5)

    print("KERNEL_OK")
</pallas_src>

<mosaic_0001>
module attributes {stable_mosaic.version = 11 : i64} {
  func.func @_critic_fc_kernel_reduce(%arg0: i32, %arg1: memref<8x8xf32, #tpu.memory_space<vmem>>, %arg2: memref<8x128xf32, #tpu.memory_space<vmem>>, %arg3: memref<1x128xf32, #tpu.memory_space<vmem>>, %arg4: memref<1x128xf32, #tpu.memory_space<vmem>>, %arg5: memref<1x1xf32, #tpu.memory_space<vmem>>, %arg6: memref<8x1xf32, #tpu.memory_space<vmem>>) attributes {dimension_semantics = [#tpu.dimension_semantics<parallel>], iteration_bounds = array<i64: 1>, scalar_prefetch = 0 : i64, scratch_operands = 0 : i64, tpu.core_type = #tpu.core_type<tc>, window_params = [{transform_indices = @transform_0, window_bounds = array<i64: 8, 8>}, {pipeline_mode = #tpu.pipeline_mode<synchronous>, transform_indices = @transform_1, window_bounds = array<i64: 8, 128>}, {pipeline_mode = #tpu.pipeline_mode<synchronous>, transform_indices = @transform_2, window_bounds = array<i64: 1, 128>}, {pipeline_mode = #tpu.pipeline_mode<synchronous>, transform_indices = @transform_3, window_bounds = array<i64: 1, 128>}, {pipeline_mode = #tpu.pipeline_mode<synchronous>, transform_indices = @transform_4, window_bounds = array<i64: 1, 1>}, {transform_indices = @transform_5, window_bounds = array<i64: 8, 1>}]} {
    %c0 = arith.constant 0 : index
    %c0_0 = arith.constant 0 : index
    %0 = vector.load %arg1[%c0, %c0_0] : memref<8x8xf32, #tpu.memory_space<vmem>>, vector<8x8xf32>
    %c0_1 = arith.constant 0 : index
    %c0_2 = arith.constant 0 : index
    %1 = vector.load %arg2[%c0_1, %c0_2] : memref<8x128xf32, #tpu.memory_space<vmem>>, vector<8x128xf32>
    %cst = arith.constant dense<0.000000e+00> : vector<8x128xf32>
    %2 = tpu.matmul %0, %1, %cst {dimension_numbers = #tpu.dot_dimension_numbers<[1], [0], [0], [1], [0, 0, 1, 1], [], []>} : vector<8x8xf32>, vector<8x128xf32>, vector<8x128xf32> -> vector<8x128xf32>
    %c0_3 = arith.constant 0 : index
    %c0_4 = arith.constant 0 : index
    %3 = vector.load %arg3[%c0_3, %c0_4] : memref<1x128xf32, #tpu.memory_space<vmem>>, vector<1x128xf32>
    %4 = vector.broadcast %3 : vector<1x128xf32> to vector<8x128xf32>
    %5 = arith.addf %2, %4 : vector<8x128xf32>
    %cst_5 = arith.constant 0.000000e+00 : f32
    %6 = vector.broadcast %cst_5 : f32 to vector<8x128xf32>
    %7 = arith.maximumf %5, %6 : vector<8x128xf32>
    %c0_6 = arith.constant 0 : index
    %c0_7 = arith.constant 0 : index
    %8 = vector.load %arg4[%c0_6, %c0_7] : memref<1x128xf32, #tpu.memory_space<vmem>>, vector<1x128xf32>
    %9 = vector.broadcast %8 : vector<1x128xf32> to vector<8x128xf32>
    %10 = arith.mulf %7, %9 : vector<8x128xf32>
    %cst_8 = arith.constant dense<0.000000e+00> : vector<8xf32>
    %11 = vector.multi_reduction <add>, %10, %cst_8 [1] : vector<8x128xf32> to vector<8xf32>
    %12 = vector.shape_cast %11 : vector<8xf32> to vector<8x1xf32>
    %c0_9 = arith.constant 0 : index
    %c0_10 = arith.constant 0 : index
    %13 = vector.load %arg5[%c0_9, %c0_10] : memref<1x1xf32, #tpu.memory_space<vmem>>, vector<1x1xf32>
    %14 = vector.broadcast %13 : vector<1x1xf32> to vector<8x1xf32>
    %15 = arith.addf %12, %14 : vector<8x1xf32>
    %c0_11 = arith.constant 0 : index
    %c0_12 = arith.constant 0 : index
    %16 = vector.load %arg6[%c0_11, %c0_12] : memref<8x1xf32, #tpu.memory_space<vmem>>, vector<8x1xf32>
    tpu.vector_store %arg6[%c0_11, %c0_12], %15 {strides = array<i32>} : memref<8x1xf32, #tpu.memory_space<vmem>>, vector<8x1xf32>,
    return
  }
  func.func @transform_0(%arg0: i32) -> (i32, i32) {
    %c0_i32 = arith.constant 0 : i32
    %c0_i32_0 = arith.constant 0 : i32
    return %arg0, %c0_i32 : i32, i32
  }
  func.func @transform_1(%arg0: i32) -> (i32, i32) {
    %c0_i32 = arith.constant 0 : i32
    %c0_i32_0 = arith.constant 0 : i32
    %c0_i32_1 = arith.constant 0 : i32
    return %c0_i32, %c0_i32_0 : i32, i32
  }
  func.func @transform_2(%arg0: i32) -> (i32, i32) {
    %c0_i32 = arith.constant 0 : i32
    %c0_i32_0 = arith.constant 0 : i32
    %c0_i32_1 = arith.constant 0 : i32
    return %c0_i32, %c0_i32_0 : i32, i32
  }
  func.func @transform_3(%arg0: i32) -> (i32, i32) {
    %c0_i32 = arith.constant 0 : i32
    %c0_i32_0 = arith.constant 0 : i32
    %c0_i32_1 = arith.constant 0 : i32
    return %c0_i32, %c0_i32_0 : i32, i32
  }
  func.func @transform_4(%arg0: i32) -> (i32, i32) {
    %c0_i32 = arith.constant 0 : i32
    %c0_i32_0 = arith.constant 0 : i32
    %c0_i32_1 = arith.constant 0 : i32
    return %c0_i32, %c0_i32_0 : i32, i32
  }
  func.func @transform_5(%arg0: i32) -> (i32, i32) {
    %c0_i32 = arith.constant 0 : i32
    %c0_i32_0 = arith.constant 0 : i32
    return %arg0, %c0_i32 : i32, i32
  }
}

</mosaic_0001>

<bundles_post_ra>
// kernel: tpu_custom_call.1
= control target key start
LH: loop header
LB: loop body
LE: loop exit
PB: predicated region body
PF: predicated region fallthrough
CT: control target
= control target key end

     0   :  { %s289_s0 = inlined_call_operand.hbm [shape: f32[8,8], index: 0, kind: input, shape index: {}]   ;;  %s290_s1 = inlined_call_operand.hbm [shape: f32[8,128], index: 1, kind: input, shape index: {}]   ;;  %s291_s2 = inlined_call_operand.vmem [shape: f32[1,128], index: 2, kind: input, shape index: {}]   ;;  %s292_s3 = inlined_call_operand.vmem [shape: f32[1,128], index: 3, kind: input, shape index: {}]   ;;  %s293_s4 = inlined_call_operand.<no memory space> [shape: f32[1,1], index: 4, kind: input, shape index: {}]   ;;  %s294_s5 = inlined_call_operand.vmem [shape: f32[8,1], index: 5, kind: output, shape index: {}]  }
   0x1   :  { %v10_v0 = vstv %s293_s4 }
   0x2   :  { %11 = vst [vmem:[#allocation2] sm:$0x1] %v10_v0 }
   0x3   :  { %12 = vsyncpa [#allocation4], 0 }
   0x4   :  { %13 = vsyncpa [#allocation6], 0  ;;  %s219_s20 = smov [#allocation3]   ;;  %s220_s22 = smov [#allocation5]  }
   0x5   :  { %s20_s21 = sshll.u32 %s219_s20, 4  ;;  %s30_s23 = sshll.u32 %s220_s22, 4  ;;  %s21_s21 = int_to_ptr.vmem [resolvable:$true] %s20_s21  ;;  %s31_s23 = int_to_ptr.vmem [resolvable:$true] %s30_s23 }
   0x6   :  { %s171_s26 = scalar_lea.hbm %s289_s0, 128 }
   0x7   :  { %p172_p0 = scmp.ne.s32.totalorder %s289_s0, %s171_s26  ;;  %p175_p1 = scmp.lt.u32.totalorder %s171_s26, %s289_s0 }
   0x9   :  { %p177_p2 = pnand %p175_p1, %p172_p0 }
   0xb   :  { %180 = shalt.err (!%p177_p2)
}
   0xc   :  { %s181_s4 = scalar_lea.vmem %s21_s21, 128  ;;  %p186_p4 = scmp.lt.s32.totalorder %s21_s21, %s21_s21 }
   0xd   :  { %p182_p3 = scmp.ne.s32.totalorder %s21_s21, %s181_s4  ;;  %p187_p5 = scmp.lt.s32.totalorder %s181_s4, %s181_s4 }
   0xf   :  { %p188_p6 = por %p187_p5, %p186_p4 }
  0x11   :  { %p189_p7 = pnand %p188_p6, %p182_p3 }
  0x13   :  { %192 = shalt.err (!%p189_p7)
}
  0x14   :  { %23 = dma.hbm_to_vmem [thread:$0]  %s289_s0, 128, %s21_s21, [#allocation4]  }
  0x15   :  { %s193_s10 = scalar_lea.hbm %s290_s1, 128 }
  0x16   :  { %p194_p8 = scmp.ne.s32.totalorder %s290_s1, %s193_s10  ;;  %p197_p9 = scmp.lt.u32.totalorder %s193_s10, %s290_s1 }
  0x18   :  { %p199_p10 = pnand %p197_p9, %p194_p8 }
  0x1a   :  { %202 = shalt.err (!%p199_p10)
}
  0x1b   :  { %s203_s15 = scalar_lea.vmem %s31_s23, 128  ;;  %p208_p12 = scmp.lt.s32.totalorder %s31_s23, %s31_s23 }
  0x1c   :  { %p204_p11 = scmp.ne.s32.totalorder %s31_s23, %s203_s15  ;;  %p209_p13 = scmp.lt.s32.totalorder %s203_s15, %s203_s15 }
  0x1e   :  { %p210_p0 = por %p209_p13, %p208_p12 }
  0x20   :  { %p211_p1 = pnand %p210_p0, %p204_p11 }
  0x22   :  { %214 = shalt.err (!%p211_p1)
}
  0x23   :  { %33 = dma.hbm_to_vmem [thread:$0]  %s290_s1, 128, %s31_s23, [#allocation6]  }
  0x24   :  { %215 = dma.done.wait [#allocation4], 128  }
  0x25   :  { %216 = vsyncadd [#allocation4], 4294967168 }
  0x26   :  { %217 = dma.done.wait [#allocation6], 128  }
  0x27   :  { %218 = vsyncadd [#allocation6], 4294967168  ;;  %v221_v1 = vmov 0.0   ;;  %vm222_vm0 = vmmov 0   ;;  %vm55_vm1 = vcmask 64512   ;;  %v47_v2 = vld [vmem:[#allocation5] sm:$0xff] }
  0x28   :  { %162 = vmatprep.subr.mxu0 %v221_v1  ;;  %164 = vmatprep.mubr.msk.f32.mxu0 %vm222_vm0, %v221_v1  ;;  %v46_v3 = vld [vmem:[#allocation3] sm:$0xff]  ;;  %v156_v4 = vld [vmem:[%s291_s2] ss:$0 sm:$0xff]  ;;  %vm148_vm2 = vcmask 7168  }
  0x29   :  { %163 = vmatpush3.msra.mxu0 %v47_v2  ;;  %v158_v8 = vld [vmem:[%s292_s3] ss:$0 sm:$0xff] }
  0x2a   :  { %165 = vmatmul.mubr.msk.f32.vlgmr.msra.gmra.mrb[0].mxu0 %vm55_vm1, %v46_v3  ;;  %v159_v11 = vld [vmem:[#allocation2] ss:$0 sm:$0xff] }
  0xfd   :  { %v125_v5 = vpop.f32.mrb[0].mxu0 }
  0xfe   :  { %v126_v6 = vadd.f32 %v156_v4, %v125_v5  ;;  %v166_v7 = vpop.f32.mrb[1].mxu0 }
 0x100   :  { %v129_v9 = vmax.f32 %v126_v6, 0.0 }
 0x102   :  { %v137_v10 = vmul.f32 %v158_v8, %v129_v9 }
 0x104   :  { %138 = vadd.xlane.f32.xlu0 %v137_v10 }
 0x191   :  { %v139_v12 = vpop.xlane.xlu0 %138 }
 0x192   :  { %v147_v13 = vadd.f32 %v159_v11, %v139_v12 }
 0x194   :  { %149 = vst.msk [vmem:[%s294_s5] sm:$0xff] %vm148_vm2, %v147_v13 }
 0x195   :  { %154 = vsyncpa [#allocation4], 1 }
 0x196   :  { %155 = vsyncpa [#allocation6], 1 }

</bundles_post_ra>
